<compile_context>
chip_gen: v7x
topology: tpu7x:2x2x1
jax: 0.10.0
libtpu: 0.0.40
codegen_flags: <defaults>
</compile_context>

<pallas_src>
import functools

import jax
import jax.numpy as jnp
from jax import lax
from jax.experimental import pallas as pl
from jax.experimental.pallas import tpu as pltpu


# --------------------------------------------------------------------------
# helpers
# --------------------------------------------------------------------------

def _pick_tile(dim, target, align):
    """Largest tile <= target that is a multiple of `align` and divides `dim`
    (falls back to the full dim, which is always a legal block)."""
    if dim <= target:
        return dim
    t = (min(target, dim) // align) * align
    while t > align and dim % t != 0:
        t -= align
    if t <= 0 or dim % t != 0:
        return dim
    return t


def _prepare_additive_mask(attention_mask, B, S):
    """Return an additive mask [B, 1, S] (f32) or None.

    Float masks are assumed to already be additive (HF extended mask style);
    bool / integer masks are treated as 1 = keep, 0 = drop and converted.
    """
    if attention_mask is None:
        return None
    m = jnp.asarray(attention_mask).reshape(B, S)   # accepts [B,S], [B,1,S], [B,1,1,S]
    if jnp.issubdtype(m.dtype, jnp.floating):
        add = m.astype(jnp.float32)
    else:
        add = (1.0 - m.astype(jnp.float32)) * -1e9
    return add.reshape(B, 1, S)


# --------------------------------------------------------------------------
# Kernel 1: tiled matmul + bias (fused QKV projection), bf16 in / bf16 out
# --------------------------------------------------------------------------

def _matmul_bias_kernel(x_ref, w_ref, b_ref, o_ref, acc_ref):
    k = pl.program_id(2)

    @pl.when(k == 0)
    def _():
        acc_ref[...] = jnp.zeros_like(acc_ref)

    acc_ref[...] += jnp.dot(x_ref[...], w_ref[...],
                            preferred_element_type=jnp.float32)

    @pl.when(k == pl.num_programs(2) - 1)
    def _():
        o_ref[...] = (acc_ref[...] + b_ref[...]).astype(o_ref.dtype)


def _matmul_bias(x, w, b, tm=256, tn=256, tk=512):
    M, K = x.shape
    N = w.shape[1]
    tm = _pick_tile(M, tm, 8)
    tn = _pick_tile(N, tn, 128)
    tk = _pick_tile(K, tk, 128)
    grid = (M // tm, N // tn, K // tk)
    return pl.pallas_call(
        _matmul_bias_kernel,
        out_shape=jax.ShapeDtypeStruct((M, N), jnp.bfloat16),
        grid=grid,
        in_specs=[
            pl.BlockSpec((tm, tk), lambda i, j, k: (i, k)),
            pl.BlockSpec((tk, tn), lambda i, j, k: (k, j)),
            pl.BlockSpec((1, tn), lambda i, j, k: (0, j)),
        ],
        out_specs=pl.BlockSpec((tm, tn), lambda i, j, k: (i, j)),
        scratch_shapes=[pltpu.VMEM((tm, tn), jnp.float32)],
        compiler_params=pltpu.CompilerParams(
            dimension_semantics=("parallel", "parallel", "arbitrary")),
    )(x, w, b)


# --------------------------------------------------------------------------
# Kernel 2: attention, grid = (batch, head); per-head q/k/v blocks
# --------------------------------------------------------------------------

def _attn_body(q, k, v, mask, o_ref):
    # q, k, v: [S, dH] bf16.  1/sqrt(dH) is pre-folded into Wq.
    # Contract head_dim directly (no k.T -> no XLU transpose).
    s = lax.dot_general(q, k, (((1,), (1,)), ((), ())),
                        preferred_element_type=jnp.float32)          # [S, S]
    if mask is not None:
        s = s + mask                                                 # [1,S] bcast
    s = s - jnp.max(s, axis=-1, keepdims=True)
    p = jnp.exp(s)
    p = p * pl.reciprocal(jnp.sum(p, axis=-1, keepdims=True), approx=True)
    ctx = jnp.dot(p.astype(jnp.bfloat16), v,
                  preferred_element_type=jnp.float32)                # [S, dH]
    o_ref[0, 0] = ctx.astype(o_ref.dtype)


def _attn_kernel_nomask(q_ref, k_ref, v_ref, o_ref):
    _attn_body(q_ref[0, 0, 0], k_ref[0, 0, 0], v_ref[0, 0, 0], None, o_ref)


def _attn_kernel_mask(q_ref, k_ref, v_ref, mask_ref, o_ref):
    _attn_body(q_ref[0, 0, 0], k_ref[0, 0, 0], v_ref[0, 0, 0],
               mask_ref[0], o_ref)


def _attention(qkv5, mask, num_heads, head_dim):
    # qkv5: [3, nH, B, S, dH] bf16; mask: [B, 1, S] f32 additive, or None.
    _, nH, B, S, dH = qkv5.shape
    q_spec = pl.BlockSpec((1, 1, 1, S, dH), lambda b, h: (0, h, b, 0, 0))
    k_spec = pl.BlockSpec((1, 1, 1, S, dH), lambda b, h: (1, h, b, 0, 0))
    v_spec = pl.BlockSpec((1, 1, 1, S, dH), lambda b, h: (2, h, b, 0, 0))
    if mask is None:
        kern = _attn_kernel_nomask
        in_specs = [q_spec, k_spec, v_spec]
        args = (qkv5, qkv5, qkv5)
    else:
        kern = _attn_kernel_mask
        in_specs = [q_spec, k_spec, v_spec,
                    pl.BlockSpec((1, 1, S), lambda b, h: (b, 0, 0))]
        args = (qkv5, qkv5, qkv5, mask)
    return pl.pallas_call(
        kern,
        out_shape=jax.ShapeDtypeStruct((nH, B, S, dH), jnp.bfloat16),
        grid=(B, nH),
        in_specs=in_specs,
        out_specs=pl.BlockSpec((1, 1, S, dH), lambda b, h: (h, b, 0, 0)),
        compiler_params=pltpu.CompilerParams(
            dimension_semantics=("parallel", "parallel")),
    )(*args)


# --------------------------------------------------------------------------
# Kernel 3: output dense (reduced over heads) + residual + LN1 + LN2
# --------------------------------------------------------------------------

def _attn_out_kernel(ctx_ref, wo_ref, bo_ref, res_ref, g1_ref, b1_ref,
                     g2_ref, b2_ref, attn_out_ref, ln2_ref, acc_ref, *, eps):
    h = pl.program_id(1)

    @pl.when(h == 0)
    def _():
        acc_ref[...] = jnp.zeros_like(acc_ref)

    # per-head contribution of the output dense: ctx_h [tm,dH] @ Wo_h [dH,H]
    acc_ref[...] += jnp.dot(ctx_ref[0], wo_ref[0],
                            preferred_element_type=jnp.float32)

    @pl.when(h == pl.num_programs(1) - 1)
    def _():
        # BertSelfOutput: LayerNorm(dense(ctx) + residual)
        x = acc_ref[...] + bo_ref[...] + res_ref[...].astype(jnp.float32)
        mu = jnp.mean(x, axis=-1, keepdims=True)
        xc = x - mu
        var = jnp.mean(xc * xc, axis=-1, keepdims=True)
        attn_out = xc * lax.rsqrt(var + eps) * g1_ref[...] + b1_ref[...]
        attn_out_ref[...] = attn_out.astype(attn_out_ref.dtype)
        # layer-level LayerNorm (feed_forward_chunk)
        mu2 = jnp.mean(attn_out, axis=-1, keepdims=True)
        yc = attn_out - mu2
        var2 = jnp.mean(yc * yc, axis=-1, keepdims=True)
        ln2 = yc * lax.rsqrt(var2 + eps) * g2_ref[...] + b2_ref[...]
        ln2_ref[...] = ln2.astype(ln2_ref.dtype)


def _attn_out_ln(ctx_h, wo_h, bo, resid, g1, b1, g2, b2, eps, tm=256):
    nH, T, dH = ctx_h.shape
    H = wo_h.shape[2]
    tm = _pick_tile(T, tm, 8)
    grid = (T // tm, nH)
    kern = functools.partial(_attn_out_kernel, eps=eps)
    return pl.pallas_call(
        kern,
        out_shape=(jax.ShapeDtypeStruct((T, H), jnp.bfloat16),
                   jax.ShapeDtypeStruct((T, H), jnp.bfloat16)),
        grid=grid,
        in_specs=[
            pl.BlockSpec((1, tm, dH), lambda i, h: (h, i, 0)),   # ctx (per head)
            pl.BlockSpec((1, dH, H), lambda i, h: (h, 0, 0)),    # Wo  (per head)
            pl.BlockSpec((1, H), lambda i, h: (0, 0)),           # bo
            pl.BlockSpec((tm, H), lambda i, h: (i, 0)),          # residual
            pl.BlockSpec((1, H), lambda i, h: (0, 0)),           # ln1 gamma
            pl.BlockSpec((1, H), lambda i, h: (0, 0)),           # ln1 beta
            pl.BlockSpec((1, H), lambda i, h: (0, 0)),           # ln2 gamma
            pl.BlockSpec((1, H), lambda i, h: (0, 0)),           # ln2 beta
        ],
        out_specs=(
            pl.BlockSpec((tm, H), lambda i, h: (i, 0)),          # attention_output
            pl.BlockSpec((tm, H), lambda i, h: (i, 0)),          # LayerNorm(attention_output)
        ),
        scratch_shapes=[pltpu.VMEM((tm, H), jnp.float32)],
        compiler_params=pltpu.CompilerParams(
            dimension_semantics=("parallel", "arbitrary")),
    )(ctx_h, wo_h, bo, resid, g1, b1, g2, b2)


# --------------------------------------------------------------------------
# Kernel 4: MoE experts + gated accumulation + final residual
# grid = (token tiles, experts, intermediate tiles); experts with no routed
# tokens in the tile skip all compute via pl.when.
# --------------------------------------------------------------------------

def _moe_kernel(xln_ref, gate_ref, wup_ref, bup_ref, wnew_ref, bnew_ref,
                wdn_ref, bdn_ref, res_ref, o_ref, acc_ref):
    e = pl.program_id(1)
    ki = pl.program_id(2)
    n_e = pl.num_programs(1)
    n_ki = pl.num_programs(2)

    @pl.when(jnp.logical_and(e == 0, ki == 0))
    def _():
        # layer_output = sum_e gate_e * expert_e(x_ln) + attention_output
        acc_ref[...] = res_ref[...].astype(jnp.float32)

    # lane-dense gate tile [tm, E]; pick column e with an iota mask
    gate_tile = gate_ref[...]
    e_mask = lax.broadcasted_iota(jnp.int32, gate_tile.shape, 1) == e
    gate = jnp.sum(jnp.where(e_mask, gate_tile, 0.0),
                   axis=1, keepdims=True)                             # [tm, 1]

    @pl.when(jnp.max(gate) > 0.0)                                     # skip dead experts
    def _():
        x = xln_ref[...]                                              # [tm, H] bf16
        up = jnp.dot(x, wup_ref[0], preferred_element_type=jnp.float32) + bup_ref[0]
        new = jnp.dot(x, wnew_ref[0], preferred_element_type=jnp.float32) + bnew_ref[0]
        # exact (erf) GELU to match nn.GELU(); tanh approx would free VALU slots
        gelu = 0.5 * up * (1.0 + lax.erf(up * 0.7071067811865475))
        h = (gelu * new).astype(jnp.bfloat16)                         # [tm, ti]
        part = jnp.dot(h, wdn_ref[0], preferred_element_type=jnp.float32)

        @pl.when(ki == 0)
        def _():
            acc_ref[...] += gate * bdn_ref[0]   # down-proj bias once per expert

        acc_ref[...] += gate * part

    @pl.when(jnp.logical_and(e == n_e - 1, ki == n_ki - 1))
    def _():
        o_ref[...] = acc_ref[...].astype(o_ref.dtype)


def _moe_ffn(xln, gate_te, wup, bup, wnew, bnew, wdn, bdn, resid,
             tm=512, ti=512):
    T, H = xln.shape
    E, _, I = wup.shape
    tm = _pick_tile(T, tm, 8)
    ti = _pick_tile(I, ti, 128)
    grid = (T // tm, E, I // ti)
    # VMEM @ tm=512, ti=512, H<=1024: 3 bf16 weight tiles (double-buffered) +
    # x/out/acc tiles stay well under the 32 MiB default scoped limit (v7x-safe).
    return pl.pallas_call(
        _moe_kernel,
        out_shape=jax.ShapeDtypeStruct((T, H), jnp.bfloat16),
        grid=grid,
        in_specs=[
            pl.BlockSpec((tm, H), lambda i, e, ki: (i, 0)),        # x_ln (bf16)
            pl.BlockSpec((tm, E), lambda i, e, ki: (i, 0)),        # gate [T, E]
            pl.BlockSpec((1, H, ti), lambda i, e, ki: (e, 0, ki)), # W_up
            pl.BlockSpec((1, 1, ti), lambda i, e, ki: (e, 0, ki)), # b_up
            pl.BlockSpec((1, H, ti), lambda i, e, ki: (e, 0, ki)), # W_new
            pl.BlockSpec((1, 1, ti), lambda i, e, ki: (e, 0, ki)), # b_new
            pl.BlockSpec((1, ti, H), lambda i, e, ki: (e, ki, 0)), # W_down
            pl.BlockSpec((1, 1, H), lambda i, e, ki: (e, 0, 0)),   # b_down
            pl.BlockSpec((tm, H), lambda i, e, ki: (i, 0)),        # residual (bf16)
        ],
        out_specs=pl.BlockSpec((tm, H), lambda i, e, ki: (i, 0)),
        scratch_shapes=[pltpu.VMEM((tm, H), jnp.float32)],
        compiler_params=pltpu.CompilerParams(
            dimension_semantics=("parallel", "arbitrary", "arbitrary")),
    )(xln, gate_te, wup, bup, wnew, bnew, wdn, bdn, resid)


# --------------------------------------------------------------------------
# BertLayer / BertEncoder forward (thin JAX glue around the Pallas kernels)
# --------------------------------------------------------------------------

def bert_layer_forward(lp, hidden_states, add_mask=None):
    B, S, H = hidden_states.shape
    nH = lp["num_heads"]
    dH = H // nH
    eps = lp["layer_norm_eps"]
    E = lp["num_experts"]
    T = B * S

    x2d = hidden_states.reshape(T, H).astype(jnp.bfloat16)

    # ---- fused QKV projection (scale 1/sqrt(dH) folded into Wq) -------------
    qkv = _matmul_bias(x2d, lp["w_qkv"], lp["b_qkv"])               # [T, 3H] bf16
    # head-major layout for the (batch, head) attention grid
    qkv5 = qkv.reshape(B, S, 3, nH, dH).transpose(2, 3, 0, 1, 4)    # [3,nH,B,S,dH]

    ctx_h = _attention(qkv5, add_mask, nH, dH)                      # [nH,B,S,dH] bf16
    ctx_h = ctx_h.reshape(nH, T, dH)

    # ---- fused output dense + residual + LN(attn) + LN(ffn) -----------------
    attn_out, attn_out_ln = _attn_out_ln(
        ctx_h, lp["wo_h"], lp["bo"], x2d,
        lp["ln_attn_g"], lp["ln_attn_b"], lp["ln_ffn_g"], lp["ln_ffn_b"], eps)

    # ---- router logits: tiny matmul, kept in plain XLA (lane-dense stores) --
    router_logits = jnp.dot(attn_out_ln, lp["wr"],
                            preferred_element_type=jnp.float32) + lp["br"]  # [T, E]

    # ---- token-level top-1 (switch-style) gating (tiny, plain JAX) ----------
    probs = jax.nn.softmax(router_logits, axis=-1)
    onehot = jax.nn.one_hot(jnp.argmax(router_logits, axis=-1), E,
                            dtype=jnp.float32)
    gate_te = (onehot * probs).astype(jnp.float32)                   # [T, E]

    # ---- MoE experts + gated accumulate + residual (single kernel) ----------
    layer_out = _moe_ffn(attn_out_ln, gate_te,
                         lp["e_wup"], lp["e_bup"], lp["e_wnew"], lp["e_bnew"],
                         lp["e_wdn"], lp["e_bdn"], attn_out)

    return layer_out.reshape(B, S, H), router_logits.reshape(B, S, E)


def bert_encoder_forward(params, hidden_states, attention_mask=None):
    B, S, _ = hidden_states.shape
    add_mask = _prepare_additive_mask(attention_mask, B, S)
    all_router_logits = []
    h = hidden_states
    for lp in params["layers"]:
        h, rl = bert_layer_forward(lp, h, add_mask)
        all_router_logits.append(rl)
    return h.astype(jnp.float32), tuple(all_router_logits)


# --------------------------------------------------------------------------
# Deterministic parameter construction (bf16 matmul weights, f32 LN/bias)
# --------------------------------------------------------------------------

def make_params(key, num_layers, hidden, intermediate, num_heads, num_experts,
                layer_norm_eps=1e-12):
    dH = hidden // num_heads
    scale = 1.0 / (dH ** 0.5)
    s = 0.02

    def nrm(k, shape):
        return (s * jax.random.normal(k, shape)).astype(jnp.float32)

    layers = []
    lkeys = jax.random.split(key, num_layers)
    for li in range(num_layers):
        keys = jax.random.split(lkeys[li], 8 + num_experts)
        wq = nrm(keys[0], (hidden, hidden))
        wk = nrm(keys[1], (hidden, hidden))
        wv = nrm(keys[2], (hidden, hidden))
        # fold 1/sqrt(head_dim) into the query slice of the fused QKV weights
        w_qkv = jnp.concatenate([wq * scale, wk, wv], axis=1).astype(jnp.bfloat16)
        b_qkv = jnp.zeros((1, 3 * hidden), jnp.float32)

        wo = nrm(keys[3], (hidden, hidden))
        wo_h = wo.reshape(num_heads, dH, hidden).astype(jnp.bfloat16)

        e_wup, e_wdn = [], []
        for e in range(num_experts):
            ke = jax.random.split(keys[8 + e], 2)
            e_wup.append(nrm(ke[0], (hidden, intermediate)))
            e_wdn.append(nrm(ke[1], (intermediate, hidden)))

        layers.append(dict(
            num_heads=num_heads,
            num_experts=num_experts,
            layer_norm_eps=layer_norm_eps,
            w_qkv=w_qkv, b_qkv=b_qkv,
            wo_h=wo_h,
            bo=jnp.zeros((1, hidden), jnp.float32),
            ln_attn_g=jnp.ones((1, hidden), jnp.float32),
            ln_attn_b=jnp.zeros((1, hidden), jnp.float32),
            ln_ffn_g=jnp.ones((1, hidden), jnp.float32),
            ln_ffn_b=jnp.zeros((1, hidden), jnp.float32),
            wr=nrm(keys[4], (hidden, num_experts)).astype(jnp.bfloat16),
            br=jnp.zeros((1, num_experts), jnp.float32),
            e_wup=jnp.stack(e_wup).astype(jnp.bfloat16),
            e_bup=jnp.zeros((num_experts, 1, intermediate), jnp.float32),
            # new_linear: weight zeroed, bias filled with 1.0 (per __init__)
            e_wnew=jnp.zeros((num_experts, hidden, intermediate), jnp.bfloat16),
            e_bnew=jnp.ones((num_experts, 1, intermediate), jnp.float32),
            e_wdn=jnp.stack(e_wdn).astype(jnp.bfloat16),
            e_bdn=jnp.zeros((num_experts, 1, hidden), jnp.float32),
        ))
    return dict(layers=layers)


# --------------------------------------------------------------------------

if __name__ == "__main__":
    B, S, H = 2, 8, 32
    INTERMEDIATE = 64
    NUM_HEADS = 2
    NUM_EXPERTS = 2
    NUM_LAYERS = 2

    key = jax.random.PRNGKey(0)
    k_par, k_inp = jax.random.split(key)

    params = make_params(k_par, NUM_LAYERS, H, INTERMEDIATE, NUM_HEADS,
                         NUM_EXPERTS)
    hidden_states = jax.random.normal(k_inp, (B, S, H), dtype=jnp.float32)

    # no attention mask
    last_hidden, all_router_logits = bert_encoder_forward(
        params, hidden_states, attention_mask=None)
    jax.block_until_ready(last_hidden)
    for rl in all_router_logits:
        jax.block_until_ready(rl)

    # with a 0/1 keep-mask (converted to additive inside)
    attn_mask = jnp.ones((B, S), dtype=jnp.int32).at[1, 6:].set(0)
    last_hidden_m, router_m = bert_encoder_forward(
        params, hidden_states, attention_mask=attn_mask)
    jax.block_until_ready(last_hidden_m)

    assert last_hidden.shape == (B, S, H)
    assert len(all_router_logits) == NUM_LAYERS
    assert all(rl.shape == (B, S, NUM_EXPERTS) for rl in all_router_logits)
    assert bool(jnp.all(jnp.isfinite(last_hidden)))
    assert bool(jnp.all(jnp.isfinite(last_hidden_m)))
    print("KERNEL_OK")
</pallas_src>

<mosaic_0001>
module attributes {stable_mosaic.version = 11 : i64} {
  func.func @_matmul_bias_kernel(%arg0: i32, %arg1: i32, %arg2: i32, %arg3: memref<16x32xbf16, #tpu.memory_space<vmem>>, %arg4: memref<32x96xbf16, #tpu.memory_space<vmem>>, %arg5: memref<1x96xf32, #tpu.memory_space<vmem>>, %arg6: memref<16x96xbf16, #tpu.memory_space<vmem>>, %arg7: memref<16x96xf32, #tpu.memory_space<vmem>>) attributes {dimension_semantics = [#tpu.dimension_semantics<parallel>, #tpu.dimension_semantics<parallel>, #tpu.dimension_semantics<arbitrary>], iteration_bounds = array<i64: 1, 1, 1>, scalar_prefetch = 0 : i64, scratch_operands = 1 : i64, tpu.core_type = #tpu.core_type<tc>, window_params = [{transform_indices = @transform_0, window_bounds = array<i64: 16, 32>}, {transform_indices = @transform_1, window_bounds = array<i64: 32, 96>}, {transform_indices = @transform_2, window_bounds = array<i64: 1, 96>}, {transform_indices = @transform_3, window_bounds = array<i64: 16, 96>}]} {
    %c0_i32 = arith.constant 0 : i32
    %0 = arith.cmpi eq, %arg2, %c0_i32 : i32
    %1 = arith.extui %0 : i1 to i32
    %c0_i32_0 = arith.constant 0 : i32
    %2 = arith.cmpi ne, %1, %c0_i32_0 : i32
    scf.if %2 {
      %cst_10 = arith.constant 0.000000e+00 : f32
      %12 = vector.broadcast %cst_10 : f32 to vector<16x96xf32>
      %c0_11 = arith.constant 0 : index
      %c0_12 = arith.constant 0 : index
      %13 = vector.load %arg7[%c0_11, %c0_12] : memref<16x96xf32, #tpu.memory_space<vmem>>, vector<16x96xf32>
      tpu.vector_store %arg7[%c0_11, %c0_12], %12 {strides = array<i32>} : memref<16x96xf32, #tpu.memory_space<vmem>>, vector<16x96xf32>,
    } else {
    }
    %c0 = arith.constant 0 : index
    %c0_1 = arith.constant 0 : index
    %3 = vector.load %arg7[%c0, %c0_1] : memref<16x96xf32, #tpu.memory_space<vmem>>, vector<16x96xf32>
    %c0_2 = arith.constant 0 : index
    %c0_3 = arith.constant 0 : index
    %4 = vector.load %arg3[%c0_2, %c0_3] : memref<16x32xbf16, #tpu.memory_space<vmem>>, vector<16x32xbf16>
    %c0_4 = arith.constant 0 : index
    %c0_5 = arith.constant 0 : index
    %5 = vector.load %arg4[%c0_4, %c0_5] : memref<32x96xbf16, #tpu.memory_space<vmem>>, vector<32x96xbf16>
    %cst = arith.constant dense<0.000000e+00> : vector<16x96xf32>
    %6 = tpu.matmul %4, %5, %cst {dimension_numbers = #tpu.dot_dimension_numbers<[1], [0], [0], [1], [0, 0, 1, 1], [], []>} : vector<16x32xbf16>, vector<32x96xbf16>, vector<16x96xf32> -> vector<16x96xf32>
    %7 = arith.addf %3, %6 : vector<16x96xf32>
    %c0_6 = arith.constant 0 : index
    %c0_7 = arith.constant 0 : index
    %8 = vector.load %arg7[%c0_6, %c0_7] : memref<16x96xf32, #tpu.memory_space<vmem>>, vector<16x96xf32>
    tpu.vector_store %arg7[%c0_6, %c0_7], %7 {strides = array<i32>} : memref<16x96xf32, #tpu.memory_space<vmem>>, vector<16x96xf32>,
    %c0_i32_8 = arith.constant 0 : i32
    %9 = arith.cmpi eq, %arg2, %c0_i32_8 : i32
    %10 = arith.extui %9 : i1 to i32
    %c0_i32_9 = arith.constant 0 : i32
    %11 = arith.cmpi ne, %10, %c0_i32_9 : i32
    scf.if %11 {
      %c0_10 = arith.constant 0 : index
      %c0_11 = arith.constant 0 : index
      %12 = vector.load %arg7[%c0_10, %c0_11] : memref<16x96xf32, #tpu.memory_space<vmem>>, vector<16x96xf32>
      %c0_12 = arith.constant 0 : index
      %c0_13 = arith.constant 0 : index
      %13 = vector.load %arg5[%c0_12, %c0_13] : memref<1x96xf32, #tpu.memory_space<vmem>>, vector<1x96xf32>
      %14 = vector.broadcast %13 : vector<1x96xf32> to vector<16x96xf32>
      %15 = arith.addf %12, %14 : vector<16x96xf32>
      %16 = arith.truncf %15 : vector<16x96xf32> to vector<16x96xbf16>
      %c0_14 = arith.constant 0 : index
      %c0_15 = arith.constant 0 : index
      %17 = vector.load %arg6[%c0_14, %c0_15] : memref<16x96xbf16, #tpu.memory_space<vmem>>, vector<16x96xbf16>
      tpu.vector_store %arg6[%c0_14, %c0_15], %16 {strides = array<i32>} : memref<16x96xbf16, #tpu.memory_space<vmem>>, vector<16x96xbf16>,
    } else {
    }
    return
  }
  func.func @transform_0(%arg0: i32, %arg1: i32, %arg2: i32) -> (i32, i32) {
    %c0_i32 = arith.constant 0 : i32
    return %arg0, %arg2 : i32, i32
  }
  func.func @transform_1(%arg0: i32, %arg1: i32, %arg2: i32) -> (i32, i32) {
    %c0_i32 = arith.constant 0 : i32
    return %arg2, %arg1 : i32, i32
  }
  func.func @transform_2(%arg0: i32, %arg1: i32, %arg2: i32) -> (i32, i32) {
    %c0_i32 = arith.constant 0 : i32
    %c0_i32_0 = arith.constant 0 : i32
    return %c0_i32, %arg1 : i32, i32
  }
  func.func @transform_3(%arg0: i32, %arg1: i32, %arg2: i32) -> (i32, i32) {
    %c0_i32 = arith.constant 0 : i32
    return %arg0, %arg1 : i32, i32
  }
}

</mosaic_0001>

<bundles_post_ra>
// kernel: tpu_custom_call.1
= control target key start
LH: loop header
LB: loop body
LE: loop exit
PB: predicated region body
PF: predicated region fallthrough
CT: control target
= control target key end

     0   :  { %8 = vsyncpa [#allocation4], 0  ;;  %s350_s0 = inlined_call_operand.hbm [shape: bf16[16,32], index: 0, kind: input, shape index: {}]   ;;  %s351_s1 = inlined_call_operand.hbm [shape: bf16[32,96], index: 1, kind: input, shape index: {}]   ;;  %s352_s2 = inlined_call_operand.vmem [shape: f32[1,96], index: 2, kind: input, shape index: {}]   ;;  %s353_s3 = inlined_call_operand.hbm [shape: bf16[16,96], index: 3, kind: output, shape index: {}]  }
   0x1   :  { %9 = vsyncpa [#allocation7], 0 }
   0x2   :  { %10 = vsyncpa [#allocation5], 0  ;;  %s271_s12 = smov [#allocation3]   ;;  %s199_s16 = scalar_lea.hbm %s350_s0, 128 }
   0x3   :  { %s16_s13 = sshll.u32 %s271_s12, 4  ;;  %p200_p0 = scmp.ne.s32.totalorder %s350_s0, %s199_s16  ;;  %s17_s13 = int_to_ptr.vmem [resolvable:$true] %s16_s13 }
   0x4   :  { %p203_p1 = scmp.lt.u32.totalorder %s199_s16, %s350_s0 }
   0x6   :  { %p205_p2 = pnand %p203_p1, %p200_p0 }
   0x8   :  { %208 = shalt.err (!%p205_p2)
}
   0x9   :  { %s209_s21 = scalar_lea.vmem %s17_s13, 128  ;;  %p214_p4 = scmp.lt.s32.totalorder %s17_s13, %s17_s13 }
   0xa   :  { %p210_p3 = scmp.ne.s32.totalorder %s17_s13, %s209_s21  ;;  %p215_p5 = scmp.lt.s32.totalorder %s209_s21, %s209_s21 }
   0xc   :  { %p216_p6 = por %p215_p5, %p214_p4 }
   0xe   :  { %p217_p7 = pnand %p216_p6, %p210_p3 }
  0x10   :  { %220 = shalt.err (!%p217_p7)
}
  0x11   :  { %s272_s22 = smov 64   ;;  %s273_s23 = smov 4  }
  0x12   :  { %22 = dma.hbm_to_vmem [thread:$0]  %s350_s0, 128, %s17_s13, [#allocation4], %s272_s22, %s272_s22, %s273_s23  }
  0x13   :  { %s274_s26 = smov [#allocation6]   ;;  %s221_s30 = scalar_lea.hbm %s351_s1, 256 }
  0x14   :  { %s28_s27 = sshll.u32 %s274_s26, 4  ;;  %p222_p8 = scmp.ne.s32.totalorder %s351_s1, %s221_s30  ;;  %s29_s27 = int_to_ptr.vmem [resolvable:$true] %s28_s27 }
  0x15   :  { %p225_p9 = scmp.lt.u32.totalorder %s221_s30, %s351_s1 }
  0x17   :  { %p227_p10 = pnand %p225_p9, %p222_p8 }
  0x19   :  { %230 = shalt.err (!%p227_p10)
}
  0x1a   :  { %s231_s8 = scalar_lea.vmem %s29_s27, 256  ;;  %p236_p12 = scmp.lt.s32.totalorder %s29_s27, %s29_s27 }
  0x1b   :  { %p232_p11 = scmp.ne.s32.totalorder %s29_s27, %s231_s8  ;;  %p237_p13 = scmp.lt.s32.totalorder %s231_s8, %s231_s8 }
  0x1d   :  { %p238_p0 = por %p237_p13, %p236_p12 }
  0x1f   :  { %p239_p1 = pnand %p238_p0, %p232_p11 }
  0x21   :  { %242 = shalt.err (!%p239_p1)
}
  0x22   :  { %34 = dma.hbm_to_vmem [thread:$0]  %s351_s1, 256, %s29_s27, [#allocation7], %s272_s22, %s272_s22, %s273_s23  }
  0x23   :  { %265 = dma.done.wait [#allocation4], 128  }
  0x24   :  { %266 = vsyncadd [#allocation4], 4294967168 }
  0x25   :  { %267 = dma.done.wait [#allocation7], 256  }
  0x26   :  { %268 = vsyncadd [#allocation7], 4294967040  ;;  %vm48_vm0 = vcmask 785408   ;;  %v275_v0 = vmov 0.0   ;;  %vm276_vm1 = vmmov 0   ;;  %v196_v1 = vld [vmem:[#allocation6] sm:$0xff]  }
  0x27   :  { %49 = vst.msk [vmem:[#allocation2] sm:$0xff] %vm48_vm0, %v275_v0  ;;  %50 = vst.msk [vmem:[#allocation2 + $0x8] sm:$0xff] %vm48_vm0, %v275_v0  ;;  %181 = vmatprep.subr.bf16.mxu0 %v275_v0  ;;  %185 = vmatprep.mubr.msk.bf16.mxu0 %vm276_vm1, %v275_v0  ;;  %v197_v2 = vld [vmem:[#allocation6 + $0x8] sm:$0xff]   ;;  %v198_v3 = vld [vmem:[#allocation3] sm:$0xff]   ;;  %vm76_vm2 = vcmask 261120   ;;  %vm148_vm3 = vcmask 781312  }
  0x28   :  { %182 = vmatpush3.bf16.msra.mxu0 %v196_v1  ;;  %v173_v12 = vld [vmem:[%s352_s2] ss:$0 sm:$0xff]  ;;  %s277_s11 = smov [#allocation8]  }
  0x29   :  { %183 = vmatprep.subr.bf16.mxu0 %v275_v0  ;;  %s156_s12 = sshll.u32 %s277_s11, 4  ;;  %s157_s12 = int_to_ptr.vmem [resolvable:$true] %s156_s12 }
  0x2a   :  { %s243_s13 = scalar_lea.vmem %s157_s12, 128  ;;  %p248_p3 = scmp.lt.s32.totalorder %s157_s12, %s157_s12 }
  0x2b   :  { %p244_p2 = scmp.ne.s32.totalorder %s157_s12, %s243_s13  ;;  %p249_p4 = scmp.lt.s32.totalorder %s243_s13, %s243_s13 }
  0x2c   :  { %184 = vmatpush3.bf16.msra.mxu0 %v197_v2 }
  0x2d   :  { %p250_p5 = por %p249_p4, %p248_p3 }
  0x2e   :  { %v51_v4 = vld [vmem:[#allocation2] sm:$0xff]  ;;  %v52_v6 = vld [vmem:[#allocation2 + $0x8] sm:$0xff] }
  0x2f   :  { %186 = vmatmul.mubr.msk.bf16.vlgmr.msra.gmra.mrb[0].mxu0 %vm76_vm2, %v198_v3  ;;  %p251_p6 = pnand %p250_p5, %p244_p2 }
 0x102   :  { %v114_v5 = vpop.f32.mrb[0].mxu0 }
 0x103   :  { %v121_v7 = vadd.f32 %v114_v5, %v51_v4  ;;  %v187_v8 = vpop.f32.mrb[1].mxu0 }
 0x104   :  { %v117_v9 = vpop.f32.mrb[2].mxu0 }
 0x105   :  { %124 = vst.msk [vmem:[#allocation2] sm:$0xff] %vm48_vm0, %v121_v7  ;;  %v122_v10 = vadd.f32 %v117_v9, %v52_v6  ;;  %v188_v11 = vpop.f32.mrb[3].mxu0 }
 0x107   :  { %125 = vst.msk [vmem:[#allocation2 + $0x8] sm:$0xff] %vm48_vm0, %v122_v10 }
 0x10c   :  { %v129_v13 = vld [vmem:[#allocation2] sm:$0xff] }
 0x10d   :  { %v138_v14 = vadd.f32 %v173_v12, %v129_v13 }
 0x10e   :  { %v130_v15 = vld [vmem:[#allocation2 + $0x8] sm:$0xff] }
 0x10f   :  { %v139_v16 = vadd.f32 %v173_v12, %v130_v15  ;;  %v176_v17 = vpack.c.bf16 %v138_v14, %v138_v14 }
 0x111   :  { %v177_v18 = vpack.c.bf16 %v139_v16, %v139_v16  ;;  %149 = vst.msk [vmem:[#allocation8] sm:$0xf] %vm148_vm3, %v176_v17 }
 0x113   :  { %150 = vst.msk [vmem:[#allocation8 + $0x4] sm:$0xf] %vm148_vm3, %v177_v18 }
 0x114   :  { %254 = shalt.err (!%p251_p6)
}
 0x115   :  { %s255_s15 = scalar_lea.hbm %s353_s3, 128 }
 0x116   :  { %p256_p7 = scmp.ne.s32.totalorder %s353_s3, %s255_s15  ;;  %p259_p8 = scmp.lt.u32.totalorder %s255_s15, %s353_s3 }
 0x118   :  { %p261_p9 = pnand %p259_p8, %p256_p7 }
 0x11a   :  { %264 = shalt.err (!%p261_p9)
}
 0x11b   :  { %162 = dma.vmem_to_hbm [thread:$0]  %s157_s12, 128, %s353_s3, [#allocation5], %s272_s22, %s272_s22, %s273_s23  }
 0x11c   :  { %269 = dma.done.wait [#allocation5], 128  }
 0x11d   :  { %270 = vsyncadd [#allocation5], 4294967168 }
 0x11e   :  { %166 = vsyncpa [#allocation4], 1 }
 0x11f   :  { %167 = vsyncpa [#allocation7], 1 }
 0x120   :  { %168 = vsyncpa [#allocation5], 1 }

</bundles_post_ra>
